<compile_context>
chip_gen: v7x
topology: tpu7x:2x2x1
jax: 0.10.0
libtpu: 0.0.40
codegen_flags: <defaults>
</compile_context>

<pallas_src>
import functools

import jax
import jax.numpy as jnp
from jax.experimental import pallas as pl
from jax.experimental.pallas import tpu as pltpu


def _round_up(x, m):
    return ((x + m - 1) // m) * m


def _cdiv(a, b):
    return (a + b - 1) // b


def _tile_vmem_bytes(tm, tn, tk, in_bpe, out_bpe, with_scratch):
    """Estimated VMEM working set for one grid step (double-buffered)."""
    b = 2 * (tm * tk + tk * tn) * in_bpe       # x1 / x2 operand tiles
    b += 2 * tm * tn * out_bpe                 # output tile(s)
    if with_scratch:
        b += tm * tn * 4                       # f32 accumulator scratch
    b += 2 * (tm * 128 + 8 * tn) * 4           # inv-norm tiles (padded layout)
    return b


def _cosine_kernel_f32_out(x1_ref, x2_ref, inv_n1_ref, inv_n2_ref, o_ref):
    """float32 output: accumulate straight into the resident output tile."""
    k = pl.program_id(2)
    partial = jnp.dot(x1_ref[...], x2_ref[...], preferred_element_type=jnp.float32)

    @pl.when(k == 0)
    def _():
        o_ref[...] = partial

    @pl.when(k != 0)
    def _():
        o_ref[...] = o_ref[...] + partial

    @pl.when(k == pl.num_programs(2) - 1)
    def _():
        # Epilogue: two cheap broadcast multiplies by precomputed inverse norms.
        o_ref[...] = o_ref[...] * inv_n1_ref[...] * inv_n2_ref[...]


def _cosine_kernel_scratch(x1_ref, x2_ref, inv_n1_ref, inv_n2_ref, o_ref, acc_ref):
    """Narrow output dtypes: f32 VMEM accumulator, cast in the epilogue."""
    k = pl.program_id(2)

    @pl.when(k == 0)
    def _():
        acc_ref[...] = jnp.zeros_like(acc_ref)

    acc_ref[...] += jnp.dot(
        x1_ref[...], x2_ref[...], preferred_element_type=jnp.float32
    )

    @pl.when(k == pl.num_programs(2) - 1)
    def _():
        o_ref[...] = (acc_ref[...] * inv_n1_ref[...] * inv_n2_ref[...]).astype(
            o_ref.dtype
        )


@functools.partial(jax.jit, static_argnames=("tm", "tn", "tk"))
def cosine_similarity(x1, x2, *, tm=512, tn=512, tk=None):
    M, K = x1.shape
    K2, N = x2.shape
    if K != K2:
        raise ValueError(f"inner dims must match, got {K} vs {K2}")
    out_dtype = x1.dtype
    in_bpe = jnp.dtype(x1.dtype).itemsize
    out_bpe = jnp.dtype(out_dtype).itemsize
    use_scratch = jnp.dtype(out_dtype) != jnp.dtype(jnp.float32)

    # Per-generation VMEM budget for the tile working set (v5e/v6e: 128 MiB
    # physical -> 64 MiB budget; v7x: 64 MiB physical -> 32 MiB budget).
    try:
        vmem_cap = int(pltpu.get_tpu_info().vmem_capacity_bytes)
    except Exception:  # pragma: no cover - conservative (v7x-sized) fallback
        vmem_cap = 64 << 20
    budget = min(vmem_cap // 2, 64 << 20)

    # Dtype-aware sublane alignment: 8 (f32) / 16 (bf16) / 32 (int8 / fp8).
    align_m = max(8, 32 // max(1, in_bpe))

    # Clamp tiles to the (aligned) problem size.
    tm = _round_up(min(tm, _round_up(M, align_m)), align_m)
    tn = _round_up(min(tn, _round_up(N, 128)), 128)

    # v7x has two TensorCores and i/j are sharded across them: make sure the
    # parallel grid has >= 2 tiles when possible, splitting the axis that
    # wastes the fewest padded rows/cols.
    if _cdiv(M, tm) * _cdiv(N, tn) < 2:
        cand = []
        if M >= 2 * align_m:
            tm2 = _round_up(_cdiv(M, 2), align_m)
            cand.append((2 * tm2 - M, 0, tm2))
        if N >= 2 * 128:
            tn2 = _round_up(_cdiv(N, 2), 128)
            cand.append((2 * tn2 - N, 1, tn2))
        if cand:
            _, axis, val = min(cand)
            if axis == 0:
                tm = val
            else:
                tn = val

    # K tile: prefer one full-K block (no padding, fewer grid steps, x1 panel
    # fetched once per i); otherwise the largest 128-multiple fitting the
    # budget, with K zero-padded to a tk multiple (zeros are neutral).
    if tk is None:
        if _tile_vmem_bytes(tm, tn, K, in_bpe, out_bpe, use_scratch) <= budget:
            tk, Kp = K, K
        else:
            fixed = _tile_vmem_bytes(tm, tn, 0, in_bpe, out_bpe, use_scratch)
            per_k = 2 * (tm + tn) * in_bpe
            tk = max(128, (max(0, budget - fixed) // per_k) // 128 * 128)
            tk = min(tk, _round_up(K, 128))
            Kp = _round_up(K, tk)
    else:
        tk = _round_up(min(tk, _round_up(K, 128)), 128)
        Kp = _round_up(K, tk)

    # Inverse norms computed once (f32), on the raw inputs.
    # TODO(synk): folding the x1 row-norm into the j==0 sweep of the kernel
    # would save one extra HBM read of x1; kept in the wrapper for simplicity.
    x1f = x1.astype(jnp.float32)
    x2f = x2.astype(jnp.float32)
    inv_n1 = jax.lax.rsqrt(jnp.sum(x1f * x1f, axis=1, keepdims=True))  # (M, 1)
    inv_n2 = jax.lax.rsqrt(jnp.sum(x2f * x2f, axis=0, keepdims=True))  # (1, N)
    # Matches the reference module exactly -> no eps clamp (an all-zero row /
    # column yields inf/nan just like the torch code).
    # TODO(synk): add jnp.maximum(sum_sq, eps) if torch.nn.CosineSimilarity
    # (eps=1e-8) semantics are desired instead of the raw mm/norm module.

    # Only K needs zero padding for correctness: partial M/N edge blocks are
    # clipped on writeback, so their garbage never reaches valid outputs.
    if Kp != K:
        x1c = jnp.pad(x1, ((0, 0), (0, Kp - K)))
        x2c = jnp.pad(x2, ((0, Kp - K), (0, 0)))
    else:
        x1c, x2c = x1, x2

    grid = (_cdiv(M, tm), _cdiv(N, tn), Kp // tk)

    footprint = _tile_vmem_bytes(tm, tn, tk, in_bpe, out_bpe, use_scratch)
    vmem_limit = int(
        min(
            max(footprint + (8 << 20), 32 << 20),
            max(vmem_cap - (16 << 20), 32 << 20),
        )
    )

    kernel = _cosine_kernel_scratch if use_scratch else _cosine_kernel_f32_out
    scratch_shapes = [pltpu.VMEM((tm, tn), jnp.float32)] if use_scratch else []

    grid_spec = pltpu.PrefetchScalarGridSpec(
        num_scalar_prefetch=0,
        grid=grid,
        in_specs=[
            pl.BlockSpec((tm, tk), lambda i, j, k: (i, k)),   # x1 tile
            pl.BlockSpec((tk, tn), lambda i, j, k: (k, j)),   # x2 tile
            pl.BlockSpec((tm, 1), lambda i, j, k: (i, 0)),    # inverse row norms
            pl.BlockSpec((1, tn), lambda i, j, k: (0, j)),    # inverse col norms
        ],
        out_specs=pl.BlockSpec((tm, tn), lambda i, j, k: (i, j)),
        scratch_shapes=scratch_shapes,
    )

    return pl.pallas_call(
        kernel,
        out_shape=jax.ShapeDtypeStruct((M, N), out_dtype),
        grid_spec=grid_spec,
        compiler_params=pltpu.CompilerParams(
            dimension_semantics=("parallel", "parallel", "arbitrary"),
            vmem_limit_bytes=vmem_limit,
        ),
    )(x1c, x2c, inv_n1, inv_n2)


def cosine_similarity_ref(x1, x2):
    x = x1 @ x2
    n1 = jnp.linalg.norm(x1, axis=1)[:, None]   # (M, 1)
    n2 = jnp.linalg.norm(x2, axis=0)[None, :]   # (1, N)
    return x / (n1 @ n2)


if __name__ == "__main__":
    key = jax.random.PRNGKey(0)
    k1, k2 = jax.random.split(key)

    M, K, N = 80, 300, 384
    x1 = jax.random.normal(k1, (M, K), dtype=jnp.float32)
    x2 = jax.random.normal(k2, (K, N), dtype=jnp.float32)

    ref = cosine_similarity_ref(x1, x2)

    # 1) Default auto-tiling: single full-K block (no padding at all), two
    #    parallel output tiles (megacore-friendly), direct f32 accumulation.
    out = jax.block_until_ready(cosine_similarity(x1, x2))
    assert out.shape == (M, N)
    assert jnp.allclose(out, ref, atol=2e-3, rtol=2e-3), "mismatch (auto tiles)"

    # 2) Small explicit tiles: multi-step K reduction accumulated into the
    #    resident output tile, multiple i/j tiles, zero-padded K.
    out2 = jax.block_until_ready(cosine_similarity(x1, x2, tm=16, tn=128, tk=128))
    assert out2.shape == (M, N)
    assert jnp.allclose(out2, ref, atol=2e-3, rtol=2e-3), "mismatch (small tiles)"

    # 3) Tiles that do NOT divide M / N: exercises ragged edge blocks with no
    #    M/N padding (clipped writeback) plus a 2-step padded K reduction.
    out3 = jax.block_until_ready(cosine_similarity(x1, x2, tm=64, tn=256, tk=256))
    assert out3.shape == (M, N)
    assert jnp.allclose(out3, ref, atol=2e-3, rtol=2e-3), "mismatch (ragged tiles)"

    print("KERNEL_OK")
</pallas_src>

<mosaic_0001>
module attributes {stable_mosaic.version = 11 : i64} {
  func.func @_cosine_kernel_f32_out(%arg0: i32, %arg1: i32, %arg2: i32, %arg3: memref<40x300xf32, #tpu.memory_space<vmem>>, %arg4: memref<300x384xf32, #tpu.memory_space<vmem>>, %arg5: memref<40x1xf32, #tpu.memory_space<vmem>>, %arg6: memref<1x384xf32, #tpu.memory_space<vmem>>, %arg7: memref<40x384xf32, #tpu.memory_space<vmem>>) attributes {dimension_semantics = [#tpu.dimension_semantics<parallel>, #tpu.dimension_semantics<parallel>, #tpu.dimension_semantics<arbitrary>], iteration_bounds = array<i64: 2, 1, 1>, scalar_prefetch = 0 : i64, scratch_operands = 0 : i64, tpu.core_type = #tpu.core_type<tc>, window_params = [{transform_indices = @transform_0, window_bounds = array<i64: 40, 300>}, {transform_indices = @transform_1, window_bounds = array<i64: 300, 384>}, {transform_indices = @transform_2, window_bounds = array<i64: 40, 1>}, {transform_indices = @transform_3, window_bounds = array<i64: 1, 384>}, {transform_indices = @transform_4, window_bounds = array<i64: 40, 384>}]} {
    %c0 = arith.constant 0 : index
    %c0_0 = arith.constant 0 : index
    %0 = vector.load %arg3[%c0, %c0_0] : memref<40x300xf32, #tpu.memory_space<vmem>>, vector<40x300xf32>
    %c0_1 = arith.constant 0 : index
    %c0_2 = arith.constant 0 : index
    %1 = vector.load %arg4[%c0_1, %c0_2] : memref<300x384xf32, #tpu.memory_space<vmem>>, vector<300x384xf32>
    %cst = arith.constant dense<0.000000e+00> : vector<40x384xf32>
    %2 = tpu.matmul %0, %1, %cst {dimension_numbers = #tpu.dot_dimension_numbers<[1], [0], [0], [1], [0, 0, 1, 1], [], []>} : vector<40x300xf32>, vector<300x384xf32>, vector<40x384xf32> -> vector<40x384xf32>
    %c0_i32 = arith.constant 0 : i32
    %3 = arith.cmpi eq, %arg2, %c0_i32 : i32
    %4 = arith.extui %3 : i1 to i32
    %c0_i32_3 = arith.constant 0 : i32
    %5 = arith.cmpi ne, %4, %c0_i32_3 : i32
    scf.if %5 {
      %c0_8 = arith.constant 0 : index
      %c0_9 = arith.constant 0 : index
      %12 = vector.load %arg7[%c0_8, %c0_9] : memref<40x384xf32, #tpu.memory_space<vmem>>, vector<40x384xf32>
      tpu.vector_store %arg7[%c0_8, %c0_9], %2 {strides = array<i32>} : memref<40x384xf32, #tpu.memory_space<vmem>>, vector<40x384xf32>,
    } else {
    }
    %c0_i32_4 = arith.constant 0 : i32
    %6 = arith.cmpi ne, %arg2, %c0_i32_4 : i32
    %7 = arith.extui %6 : i1 to i32
    %c0_i32_5 = arith.constant 0 : i32
    %8 = arith.cmpi ne, %7, %c0_i32_5 : i32
    scf.if %8 {
      %c0_8 = arith.constant 0 : index
      %c0_9 = arith.constant 0 : index
      %12 = vector.load %arg7[%c0_8, %c0_9] : memref<40x384xf32, #tpu.memory_space<vmem>>, vector<40x384xf32>
      %13 = arith.addf %12, %2 : vector<40x384xf32>
      %c0_10 = arith.constant 0 : index
      %c0_11 = arith.constant 0 : index
      %14 = vector.load %arg7[%c0_10, %c0_11] : memref<40x384xf32, #tpu.memory_space<vmem>>, vector<40x384xf32>
      tpu.vector_store %arg7[%c0_10, %c0_11], %13 {strides = array<i32>} : memref<40x384xf32, #tpu.memory_space<vmem>>, vector<40x384xf32>,
    } else {
    }
    %c0_i32_6 = arith.constant 0 : i32
    %9 = arith.cmpi eq, %arg2, %c0_i32_6 : i32
    %10 = arith.extui %9 : i1 to i32
    %c0_i32_7 = arith.constant 0 : i32
    %11 = arith.cmpi ne, %10, %c0_i32_7 : i32
    scf.if %11 {
      %c0_8 = arith.constant 0 : index
      %c0_9 = arith.constant 0 : index
      %12 = vector.load %arg7[%c0_8, %c0_9] : memref<40x384xf32, #tpu.memory_space<vmem>>, vector<40x384xf32>
      %c0_10 = arith.constant 0 : index
      %c0_11 = arith.constant 0 : index
      %13 = vector.load %arg5[%c0_10, %c0_11] : memref<40x1xf32, #tpu.memory_space<vmem>>, vector<40x1xf32>
      %14 = vector.broadcast %13 : vector<40x1xf32> to vector<40x384xf32>
      %15 = arith.mulf %12, %14 : vector<40x384xf32>
      %c0_12 = arith.constant 0 : index
      %c0_13 = arith.constant 0 : index
      %16 = vector.load %arg6[%c0_12, %c0_13] : memref<1x384xf32, #tpu.memory_space<vmem>>, vector<1x384xf32>
      %17 = vector.broadcast %16 : vector<1x384xf32> to vector<40x384xf32>
      %18 = arith.mulf %15, %17 : vector<40x384xf32>
      %c0_14 = arith.constant 0 : index
      %c0_15 = arith.constant 0 : index
      %19 = vector.load %arg7[%c0_14, %c0_15] : memref<40x384xf32, #tpu.memory_space<vmem>>, vector<40x384xf32>
      tpu.vector_store %arg7[%c0_14, %c0_15], %18 {strides = array<i32>} : memref<40x384xf32, #tpu.memory_space<vmem>>, vector<40x384xf32>,
    } else {
    }
    return
  }
  func.func @transform_0(%arg0: i32, %arg1: i32, %arg2: i32) -> (i32, i32) {
    %c0_i32 = arith.constant 0 : i32
    return %arg0, %arg2 : i32, i32
  }
  func.func @transform_1(%arg0: i32, %arg1: i32, %arg2: i32) -> (i32, i32) {
    %c0_i32 = arith.constant 0 : i32
    return %arg2, %arg1 : i32, i32
  }
  func.func @transform_2(%arg0: i32, %arg1: i32, %arg2: i32) -> (i32, i32) {
    %c0_i32 = arith.constant 0 : i32
    %c0_i32_0 = arith.constant 0 : i32
    return %arg0, %c0_i32 : i32, i32
  }
  func.func @transform_3(%arg0: i32, %arg1: i32, %arg2: i32) -> (i32, i32) {
    %c0_i32 = arith.constant 0 : i32
    %c0_i32_0 = arith.constant 0 : i32
    return %c0_i32, %arg1 : i32, i32
  }
  func.func @transform_4(%arg0: i32, %arg1: i32, %arg2: i32) -> (i32, i32) {
    %c0_i32 = arith.constant 0 : i32
    return %arg0, %arg1 : i32, i32
  }
}

</mosaic_0001>

<bundles_post_ra>
// kernel: cosine_similarity.1
= control target key start
LH: loop header
LB: loop body
LE: loop exit
PB: predicated region body
PF: predicated region fallthrough
CT: control target
= control target key end

     0   :  { %9 = vsyncpa [#allocation3], 0  ;;  %s2217_s0 = inlined_call_operand.vmem [shape: f32[80,300], index: 0, kind: input, shape index: {}]   ;;  %s2218_s1 = inlined_call_operand.vmem [shape: f32[300,384], index: 1, kind: input, shape index: {}]   ;;  %s2219_s2 = inlined_call_operand.vmem [shape: f32[80,1], index: 2, kind: input, shape index: {}]   ;;  %s2220_s3 = inlined_call_operand.vmem [shape: f32[1,384], index: 3, kind: input, shape index: {}]   ;;  %s2221_s4 = inlined_call_operand.hbm [shape: f32[80,384], index: 4, kind: output, shape index: {}]  }
   0x1   :  { %11 = vsyncpa [#allocation3 + $0x1], 0  ;;  %s1590_s15 = smov 0   ;;  %s1592_s16 = smov 0  }
   0x2   :  { %s1594_s17 = smov 0   ;;  %s1596_s18 = smov 0  }
   0x3   :  { %s1598_s19 = smov 0   ;;  %s1600_s20 = smov 0  }
   0x4 LB: > { %s1169_s21 = sadd.s32 4294967295, %s1555_s20   ;;  %s1170_s22 = sadd.s32 4294967294, %s1555_s20   ;;  %s1555_s20 = sphi %s1600_s20, %s17_s20   ;;  %s1551_s19 = sphi %s1598_s19, %s2231_s19   ;;  %s1547_s18 = sphi %s1596_s18, %s2230_s18   ;;  %s1543_s17 = sphi %s1594_s17, %s2229_s17   ;;  %s1539_s16 = sphi %s1592_s16, %s2228_s16   ;;  %s1535_s15 = sphi %s1590_s15, %s2227_s15  }
   0x5   : > { %s36_s23 = sadd.s32 1, %s1551_s19  ;;  %s153_s24 = sadd.s32 1, %s1543_s17 }
   0x6   : > { %p38_p0 = scmp.ge.s32.totalorder %s36_s23, 2  ;;  %p163_p1 = scmp.ne.s32.totalorder %s1543_s17, %s1539_s16 }
   0x7   : > { %p164_p2 = scmp.eq.s32.totalorder %s1169_s21, 1  ;;  %p169_p3 = scmp.ne.s32.totalorder %s1539_s16, %s1535_s15 }
   0x8   : > { %s2233_s23 = smov (%p38_p0, %s36_s23), 0  ;;  %p170_p5 = scmp.eq.s32.totalorder %s1170_s22, 1 }
   0x9   : > { %p1630_p4 = por %p164_p2, %p163_p1  ;;  %s148_s26 = ssub.s32 %s1551_s19, %s2233_s23 }
   0xa   : > { %p1175_p6 = scmp.ge.s32.totalorder %s1555_s20, 1  ;;  %p151_p7 = scmp.eq.s32.totalorder %s148_s26, 0 }
   0xb   : > { %p1637_p8 = por %p170_p5, %p169_p3  ;;  %p235_p9 = scmp.lt.s32.totalorder %s1555_s20, 3 }
   0xc   : > { %s1643_s28 = scalar_select %p151_p7, %s1543_s17, %s153_s24  }
   0xd   : > { %p236_p10 = pnand %p1175_p6, %p235_p9 }
   0xe   : > { %v338_v0 = vld [vmem:[%s2218_s1 + $0x8] sm:$0xff] (!%p236_p10)  ;;  %v341_v1 = vld [vmem:[%s2218_s1 + $0x20] sm:$0xff] (!%p236_p10)  ;;  %v340_v6 = vld [vmem:[%s2218_s1 + $0x18] sm:$0xff] (!%p236_p10)  ;;  %v1557_v7 = vmov (!%p236_p10), 0.0   ;;  %s285_s21 = smul.u32 (!%p236_p10), 5, %s1547_s18  ;;  %vm467_vm0 = vcmask (!%p236_p10), 1043456  }
   0xf   : > { %239 = sbr.rel (%p236_p10) target bundleno = 332 (0x14c), region = 36  ;;  %v434_v2 = vld [vmem:[%s2218_s1 + $0x308] sm:$0xff] (!%p236_p10)  ;;  %v1279_v3 = vpack.c.bf16 (!%p236_p10), %v341_v1, %v338_v0  ;;  %v437_v4 = vld [vmem:[%s2218_s1 + $0x320] sm:$0xff] (!%p236_p10)  ;;  %636 = vmatprep.mubr.f32.mxu1 (!%p236_p10), %v1557_v7  ;;  %v436_v11 = vld [vmem:[%s2218_s1 + $0x318] sm:$0xff] (!%p236_p10)  ;;  %v1558_v17 = vmov (!%p236_p10), 0   ;;  %vm1559_vm1 = vmmov (!%p236_p10), 1  }
  0x10   : > { %v337_v5 = vld [vmem:[%s2218_s1] sm:$0xff] (!%p236_p10)  ;;  %v1343_v8 = vpack.c.bf16 (!%p236_p10), %v437_v4, %v434_v2  ;;  %v344_v12 = vld [vmem:[%s2218_s1 + $0x38] sm:$0xff] (!%p236_p10)  ;;  %v347_v14 = vld [vmem:[%s2218_s1 + $0x50] sm:$0xff] (!%p236_p10)  ;;  %p1683_p11 = scmp.lt.s32.totalorder (!%p236_p10), %s285_s21, 9  ;;  %1475 = vset.pattern.permute.xlu0 (!%p236_p10), %v1558_v17  ;;  %1476 = vset.pattern.permute.xlu1 (!%p236_p10), %v1558_v17  ;;  %vm451_vm3 = vcmask (!%p236_p10), 359424   ;;  %vm1561_vm4 = vmmov (!%p236_p10), 0  }
  0x11   : > { %v1281_v9 = vpack.c.bf16 (!%p236_p10), %v340_v6, %v337_v5  ;;  %v433_v10 = vld [vmem:[%s2218_s1 + $0x300] sm:$0xff] (!%p236_p10)  ;;  %1280 = vmatprep.subr.bf16.mxu0 (!%p236_p10), %v1279_v3  ;;  %v440_v15 = vld [vmem:[%s2218_s1 + $0x338] sm:$0xff] (!%p236_p10)  ;;  %v443_v16 = vld [vmem:[%s2218_s1 + $0x350] sm:$0xff] (!%p236_p10)  ;;  %v1283_v18 = vpack.c.bf16 (!%p236_p10), %v347_v14, %v344_v12  ;;  %s1418_s22 = smul.u32 (!%p236_p10), 1920, %s1547_s18  ;;  %s1562_s6 = smov (!%p236_p10), [#allocation2]  }
  0x12   : > { %v1345_v13 = vpack.c.bf16 (!%p236_p10), %v436_v11, %v433_v10  ;;  %1344 = vmatprep.subr.bf16.mxu1 (!%p236_p10), %v1343_v8  ;;  %v1347_v19 = vpack.c.bf16 (!%p236_p10), %v443_v16, %v440_v15  ;;  %v343_v20 = vld [vmem:[%s2218_s1 + $0x30] sm:$0xff] (!%p236_p10)  ;;  %v346_v21 = vld [vmem:[%s2218_s1 + $0x48] sm:$0xff] (!%p236_p10)  ;;  %v353_v26 = vld [vmem:[%s2218_s1 + $0x80] sm:$0xff] (!%p236_p10)  ;;  %s1481_s7 = sshll.u32 (!%p236_p10), %s1562_s6, 4  ;;  %s1482_s7 = int_to_ptr.vmem [resolvable:$false] %s1481_s7 }
  0x13   : > { %1282 = vmatpush1.bf16.msra.mxu0 (!%p236_p10), %v1281_v9  ;;  %v439_v22 = vld [vmem:[%s2218_s1 + $0x330] sm:$0xff] (!%p236_p10)  ;;  %v1285_v23 = vpack.c.bf16 (!%p236_p10), %v346_v21, %v343_v20  ;;  %v442_v24 = vld [vmem:[%s2218_s1 + $0x348] sm:$0xff] (!%p236_p10)  ;;  %v449_v30 = vld [vmem:[%s2218_s1 + $0x380] sm:$0xf] (!%p236_p10)  ;;  %s2160_s29 = scalar_lea.hbm (!%p236_p10), %s2221_s4, %s1418_s22 }
  0x14   : > { %1346 = vmatpush1.bf16.msra.mxu1 (!%p236_p10), %v1345_v13  ;;  %v350_v25 = vld [vmem:[%s2218_s1 + $0x68] sm:$0xff] (!%p236_p10)  ;;  %1284 = vmatprep.subr.bf16.mxu0 (!%p236_p10), %v1283_v18  ;;  %v1349_v27 = vpack.c.bf16 (!%p236_p10), %v442_v24, %v439_v22  ;;  %vm1716_vm2 = vmpackc.low (!%p236_p10), %vm467_vm0, %vm1559_vm1  ;;  %v349_v33 = vld [vmem:[%s2218_s1 + $0x60] sm:$0xff] (!%p236_p10) }
  0x15   : > { %1348 = vmatprep.subr.bf16.mxu1 (!%p236_p10), %v1347_v19  ;;  %v1287_v28 = vpack.c.bf16 (!%p236_p10), %v353_v26, %v350_v25  ;;  %v446_v29 = vld [vmem:[%s2218_s1 + $0x368] sm:$0xff] (!%p236_p10)  ;;  %v352_v34 = vld [vmem:[%s2218_s1 + $0x78] sm:$0xff] (!%p236_p10)  ;;  %v445_v35 = vld [vmem:[%s2218_s1 + $0x360] sm:$0xff] (!%p236_p10) }
  0x16   : > { %s2235_s21 = smov (!%p1683_p11, %s285_s21), 9  ;;  %v1351_v32 = vpack.c.bf16 %v449_v30, %v446_v29  ;;  %v1289_v36 = vpack.c.bf16 %v352_v34, %v349_v33  ;;  %v448_v37 = vld [vmem:[%s2218_s1 + $0x378] sm:$0xf]  ;;  %v359_v39 = vld [vmem:[%s2218_s1 + $0xb0] sm:$0xff]  ;;  %v390_v43 = vld [vmem:[%s2218_s1 + $0x1a8] sm:$0xff] }
  0x17   : > { %s1410_s5 = smul.u32 24, %s2235_s21  ;;  %1286 = vmatpush1.bf16.msra.mxu0 %v1285_v23  ;;  %v356_v38 = vld [vmem:[%s2218_s1 + $0x98] sm:$0xff]  ;;  %v1354_v40 = vpack.c.bf16 %v448_v37, %v445_v35  ;;  %v387_v42 = vld [vmem:[%s2218_s1 + $0x190] sm:$0xff]  ;;  %v358_v46 = vld [vmem:[%s2218_s1 + $0xa8] sm:$0xff]  ;;  %s1177_s10 = sshll.u32 %s2235_s21, 3 }
  0x18   : > { %1350 = vmatpush1.bf16.msra.mxu1 %v1349_v27  ;;  %1288 = vmatprep.subr.bf16.mxu0 %v1287_v28  ;;  %v1291_v41 = vpack.c.bf16 %v359_v39, %v356_v38  ;;  %v355_v44 = vld [vmem:[%s2218_s1 + $0x90] sm:$0xff]  ;;  %v1357_v45 = vpack.c.bf16 %v390_v43, %v387_v42  ;;  %v342_v48 = vld [vmem:[%s2218_s1 + $0x28] sm:$0xff]  ;;  %v365_v50 = vld [vmem:[%s2218_s1 + $0xe0] sm:$0xff]  ;;  %s1974_s21 = scalar_lea.vmem %s2219_s2, %s1177_s10 }
  0x19   : > { %s1742_s12 = scalar_lea.vmem %s2217_s0, %s1410_s5  ;;  %1353 = vmatprep.subr.msk.bf16.mxu1 %vm1716_vm2, %v1351_v32  ;;  %v339_v47 = vld [vmem:[%s2218_s1 + $0x10] sm:$0xff]  ;;  %v362_v49 = vld [vmem:[%s2218_s1 + $0xc8] sm:$0xff]  ;;  %v1293_v52 = vpack.c.bf16 %v358_v46, %v355_v44  ;;  %v393_v53 = vld [vmem:[%s2218_s1 + $0x1c0] sm:$0xff]  ;;  %s1483_s5 = scalar_lea.vmem %s1482_s7, 3840 }
  0x1a   : > { %v1771_v51 = vld [vmem:[%s1742_s12 + $0x10] sm:$0xff]  ;;  %v396_v54 = vld [vmem:[%s2218_s1 + $0x1d8] sm:$0xff]  ;;  %v1359_v55 = vpack.c.bf16 %v342_v48, %v339_v47  ;;  %v1295_v56 = vpack.c.bf16 %v365_v50, %v362_v49  ;;  %v361_v57 = vld [vmem:[%s2218_s1 + $0xc0] sm:$0xff] }
  0x1b   : > { %1290 = vmatpush1.bf16.msra.mxu0 %v1289_v36  ;;  %v364_v58 = vld [vmem:[%s2218_s1 + $0xd8] sm:$0xff]  ;;  %v345_v59 = vld [vmem:[%s2218_s1 + $0x40] sm:$0xff]  ;;  %v1361_v60 = vpack.c.bf16 %v396_v54, %v393_v53  ;;  %v371_v63 = vld [vmem:[%s2218_s1 + $0x110] sm:$0xff] }
  0x1c   : > { %1356 = vmatpush1.bf16.msk.msra.mxu1 %vm1716_vm2, %v1354_v40  ;;  %1292 = vmatprep.subr.bf16.mxu0 %v1291_v41  ;;  %v348_v61 = vld [vmem:[%s2218_s1 + $0x58] sm:$0xff]  ;;  %v399_v0 = vld [vmem:[%s2218_s1 + $0x1f0] sm:$0xff]  ;;  %v402_v1 = vld [vmem:[%s2218_s1 + $0x208] sm:$0xff]  ;;  %v1297_v2 = vpack.c.bf16 %v364_v58, %v361_v57 }
  0x1d   : > { %1358 = vmatprep.subr.bf16.mxu1 %v1357_v45  ;;  %v368_v62 = vld [vmem:[%s2218_s1 + $0xf8] sm:$0xff]  ;;  %v1363_v3 = vpack.c.bf16 %v348_v61, %v345_v59  ;;  %v367_v5 = vld [vmem:[%s2218_s1 + $0xf0] sm:$0xff]  ;;  %v370_v6 = vld [vmem:[%s2218_s1 + $0x108] sm:$0xff]  ;;  %v1365_v9 = vpack.c.bf16 %v402_v1, %v399_v0 }
  0x1e   : > { %v1299_v4 = vpack.c.bf16 %v371_v63, %v368_v62  ;;  %v351_v8 = vld [vmem:[%s2218_s1 + $0x70] sm:$0xff]  ;;  %v354_v10 = vld [vmem:[%s2218_s1 + $0x88] sm:$0xff]  ;;  %v377_v12 = vld [vmem:[%s2218_s1 + $0x140] sm:$0xff]  ;;  %v1301_v15 = vpack.c.bf16 %v370_v6, %v367_v5 }
  0x1f   : > { %1180 = vmatmul.mubr.msk.f32.vlgmr.msra.gmra.mrb[0].mxu1 %vm451_vm3, %v1771_v51  ;;  %1294 = vmatpush1.bf16.msra.mxu0 %v1293_v52  ;;  %v374_v11 = vld [vmem:[%s2218_s1 + $0x128] sm:$0xff]  ;;  %v405_v13 = vld [vmem:[%s2218_s1 + $0x220] sm:$0xff]  ;;  %v408_v14 = vld [vmem:[%s2218_s1 + $0x238] sm:$0xff]  ;;  %v1367_v17 = vpack.c.bf16 %v354_v10, %v351_v8 }
  0x20   : > { %1360 = vmatpush3.bf16.msra.mxu1 %v1359_v55  ;;  %1296 = vmatprep.subr.bf16.mxu0 %v1295_v56  ;;  %v1833_v16 = vld [vmem:[%s1742_s12 + $0x28] sm:$0xff]  ;;  %v1303_v18 = vpack.c.bf16 %v377_v12, %v374_v11  ;;  %v373_v19 = vld [vmem:[%s2218_s1 + $0x120] sm:$0xff]  ;;  %v376_v20 = vld [vmem:[%s2218_s1 + $0x138] sm:$0xff]  ;;  %v1369_v22 = vpack.c.bf16 %v408_v14, %v405_v13 }
  0x21   : > { %1362 = vmatprep.subr.bf16.mxu1 %v1361_v60  ;;  %642 = vmatprep.mubr.f32.mxu1 %v1557_v7  ;;  %v357_v21 = vld [vmem:[%s2218_s1 + $0xa0] sm:$0xff]  ;;  %v360_v23 = vld [vmem:[%s2218_s1 + $0xb8] sm:$0xff]  ;;  %v383_v25 = vld [vmem:[%s2218_s1 + $0x170] sm:$0xff]  ;;  %v1305_v29 = vpack.c.bf16 %v376_v20, %v373_v19 }
  0x22   : > { %v380_v24 = vld [vmem:[%s2218_s1 + $0x158] sm:$0xff]  ;;  %v411_v26 = vld [vmem:[%s2218_s1 + $0x250] sm:$0xff]  ;;  %v414_v27 = vld [vmem:[%s2218_s1 + $0x268] sm:$0xff]  ;;  %v1371_v30 = vpack.c.bf16 %v360_v23, %v357_v21 }
  0x23   : > { %1298 = vmatpush1.bf16.msra.mxu0 %v1297_v2  ;;  %1181 = vmatmul.mubr.msk.f32.gmra.mrb[2].mxu1 %vm451_vm3, %v1833_v16  ;;  %v1863_v28 = vld [vmem:[%s1742_s12 + $0x40] sm:$0xff]  ;;  %v1307_v32 = vpack.c.bf16 %v383_v25, %v380_v24  ;;  %v379_v33 = vld [vmem:[%s2218_s1 + $0x150] sm:$0xff]  ;;  %v382_v34 = vld [vmem:[%s2218_s1 + $0x168] sm:$0xff]  ;;  %v1373_v36 = vpack.c.bf16 %v414_v27, %v411_v26 }
  0x24   : > { %1364 = vmatpush3.bf16.msra.mxu1 %v1363_v3  ;;  %1300 = vmatprep.subr.bf16.mxu0 %v1299_v4  ;;  %v363_v35 = vld [vmem:[%s2218_s1 + $0xd0] sm:$0xff]  ;;  %v366_v37 = vld [vmem:[%s2218_s1 + $0xe8] sm:$0xff]  ;;  %v389_v39 = vld [vmem:[%s2218_s1 + $0x1a0] sm:$0xff]  ;;  %v1309_v43 = vpack.c.bf16 %v382_v34, %v379_v33 }
  0x25   : > { %1366 = vmatprep.subr.bf16.mxu1 %v1365_v9  ;;  %648 = vmatprep.mubr.f32.mxu1 %v1557_v7  ;;  %v386_v38 = vld [vmem:[%s2218_s1 + $0x188] sm:$0xff]  ;;  %v417_v40 = vld [vmem:[%s2218_s1 + $0x280] sm:$0xff]  ;;  %v420_v41 = vld [vmem:[%s2218_s1 + $0x298] sm:$0xff]  ;;  %v1375_v45 = vpack.c.bf16 %v366_v37, %v363_v35 }
  0x26   : > { %v1893_v42 = vld [vmem:[%s1742_s12 + $0x58] sm:$0xff]  ;;  %v385_v44 = vld [vmem:[%s2218_s1 + $0x180] sm:$0xff]  ;;  %v1311_v46 = vpack.c.bf16 %v389_v39, %v386_v38  ;;  %v1377_v50 = vpack.c.bf16 %v420_v41, %v417_v40  ;;  %v395_v53 = vld [vmem:[%s2218_s1 + $0x1d0] sm:$0xff] }
  0x27   : > { %1302 = vmatpush1.bf16.msra.mxu0 %v1301_v15  ;;  %1182 = vmatmul.mubr.msk.f32.gmra.mrb[4].mxu1 %vm451_vm3, %v1863_v28  ;;  %v388_v47 = vld [vmem:[%s2218_s1 + $0x198] sm:$0xff]  ;;  %v369_v48 = vld [vmem:[%s2218_s1 + $0x100] sm:$0xff]  ;;  %v423_v54 = vld [vmem:[%s2218_s1 + $0x2b0] sm:$0xff] }
  0x28   : > { %1368 = vmatpush3.bf16.msra.mxu1 %v1367_v17  ;;  %1304 = vmatprep.subr.bf16.mxu0 %v1303_v18  ;;  %v372_v49 = vld [vmem:[%s2218_s1 + $0x118] sm:$0xff]  ;;  %v426_v55 = vld [vmem:[%s2218_s1 + $0x2c8] sm:$0xff]  ;;  %v1923_v56 = vld [vmem:[%s1742_s12 + $0x70] sm:$0xff]  ;;  %v1313_v58 = vpack.c.bf16 %v388_v47, %v385_v44 }
  0x29   : > { %1370 = vmatprep.subr.bf16.mxu1 %v1369_v22  ;;  %654 = vmatprep.mubr.f32.mxu1 %v1557_v7  ;;  %v392_v52 = vld [vmem:[%s2218_s1 + $0x1b8] sm:$0xff]  ;;  %v323_v57 = vld [vmem:[%s1742_s12 + $0x8] sm:$0xff]  ;;  %v1379_v59 = vpack.c.bf16 %v372_v49, %v369_v48  ;;  %v391_v61 = vld [vmem:[%s2218_s1 + $0x1b0] sm:$0xff]  ;;  %v1381_v0 = vpack.c.bf16 %v426_v55, %v423_v54 }
  0x2a   : > { %541 = vmatprep.mubr.f32.mxu0 %v323_v57  ;;  %v1315_v60 = vpack.c.bf16 %v395_v53, %v392_v52  ;;  %v394_v62 = vld [vmem:[%s2218_s1 + $0x1c8] sm:$0xff]  ;;  %v375_v63 = vld [vmem:[%s2218_s1 + $0x130] sm:$0xff]  ;;  %v401_v3 = vld [vmem:[%s2218_s1 + $0x200] sm:$0xff] }
  0x2b   : > { %1306 = vmatpush1.bf16.msra.mxu0 %v1305_v29  ;;  %1183 = vmatmul.mubr.msk.f32.gmra.mrb[6].mxu1 %vm451_vm3, %v1893_v42  ;;  %v378_v1 = vld [vmem:[%s2218_s1 + $0x148] sm:$0xff]  ;;  %v429_v4 = vld [vmem:[%s2218_s1 + $0x2e0] sm:$0xff]  ;;  %v432_v5 = vld [vmem:[%s2218_s1 + $0x2f8] sm:$0xff]  ;;  %v1317_v6 = vpack.c.bf16 %v394_v62, %v391_v61 }
  0x2c   : > { %1372 = vmatpush3.bf16.msra.mxu1 %v1371_v30  ;;  %1308 = vmatprep.subr.bf16.mxu0 %v1307_v32  ;;  %v398_v2 = vld [vmem:[%s2218_s1 + $0x1e8] sm:$0xff]  ;;  %v1383_v8 = vpack.c.bf16 %v378_v1, %v375_v63  ;;  %v397_v10 = vld [vmem:[%s2218_s1 + $0x1e0] sm:$0xff]  ;;  %v400_v11 = vld [vmem:[%s2218_s1 + $0x1f8] sm:$0xff]  ;;  %v1385_v13 = vpack.c.bf16 %v432_v5, %v429_v4 }
  0x2d   : > { %1374 = vmatprep.subr.bf16.mxu1 %v1373_v36  ;;  %660 = vmatprep.mubr.f32.mxu1 %v1557_v7  ;;  %v1319_v9 = vpack.c.bf16 %v401_v3, %v398_v2  ;;  %v381_v12 = vld [vmem:[%s2218_s1 + $0x160] sm:$0xff]  ;;  %v384_v14 = vld [vmem:[%s2218_s1 + $0x178] sm:$0xff]  ;;  %v407_v17 = vld [vmem:[%s2218_s1 + $0x230] sm:$0xff]  ;;  %v1321_v18 = vpack.c.bf16 %v400_v11, %v397_v10  ;;  %v1560_v36 = vmov 0.0|0.0  }
  0x2e   : > { %v404_v15 = vld [vmem:[%s2218_s1 + $0x218] sm:$0xff]  ;;  %v1387_v19 = vpack.c.bf16 %v384_v14, %v381_v12  ;;  %v403_v21 = vld [vmem:[%s2218_s1 + $0x210] sm:$0xff]  ;;  %v406_v22 = vld [vmem:[%s2218_s1 + $0x228] sm:$0xff] }
  0x2f   : > { %1310 = vmatpush1.bf16.msra.mxu0 %v1309_v43  ;;  %1184 = vmatmul.mubr.msk.f32.gmra.mrb[8].mxu1 %vm451_vm3, %v1923_v56  ;;  %v1323_v20 = vpack.c.bf16 %v407_v17, %v404_v15  ;;  %v435_v23 = vld [vmem:[%s2218_s1 + $0x310] sm:$0xff]  ;;  %v438_v24 = vld [vmem:[%s2218_s1 + $0x328] sm:$0xff]  ;;  %v413_v26 = vld [vmem:[%s2218_s1 + $0x260] sm:$0xff]  ;;  %v1325_v29 = vpack.c.bf16 %v406_v22, %v403_v21 }
  0x30   : > { %1376 = vmatpush3.bf16.msra.mxu1 %v1375_v45  ;;  %1312 = vmatprep.subr.bf16.mxu0 %v1311_v46  ;;  %v410_v25 = vld [vmem:[%s2218_s1 + $0x248] sm:$0xff]  ;;  %v933_v27 = vld [vmem:[%s1974_s21] sm:$0xff]  ;;  %v935_v30 = vld [vmem:[%s1974_s21 + $0x10] sm:$0xff]  ;;  %v1390_v33 = vpack.c.bf16 %v438_v24, %v435_v23 }
  0x31   : > { %1378 = vmatprep.subr.bf16.mxu1 %v1377_v50  ;;  %731 = vmatprep.mubr.f32.mxu1 %v323_v57  ;;  %v1997_v32 = vld [vmem:[%s1742_s12] sm:$0xff]  ;;  %v412_v35 = vld [vmem:[%s2218_s1 + $0x258] sm:$0xff]  ;;  %v1327_v38 = vpack.c.bf16 %v413_v26, %v410_v25  ;;  %v419_v40 = vld [vmem:[%s2218_s1 + $0x290] sm:$0xff]  ;;  %v980_v25 = vlaneseq }
  0x32   : > { %940 = vperm.xlu0 %1475, %v933_v27   ;;  %v409_v34 = vld [vmem:[%s2218_s1 + $0x240] sm:$0xff]  ;;  %v416_v39 = vld [vmem:[%s2218_s1 + $0x278] sm:$0xff]  ;;  %950 = vperm.xlu1 %1476, %v935_v30   ;;  %v934_v45 = vld [vmem:[%s1974_s21 + $0x8] sm:$0xff] }
  0x33   : > { %1314 = vmatpush1.bf16.msra.mxu0 %v1313_v58  ;;  %v2006_v37 = vld [vmem:[%s1742_s12 + $0x20] sm:$0xff]  ;;  %v444_v43 = vld [vmem:[%s2218_s1 + $0x358] sm:$0xff]  ;;  %v1329_v44 = vpack.c.bf16 %v412_v35, %v409_v34  ;;  %v1331_v48 = vpack.c.bf16 %v419_v40, %v416_v39  ;;  %v415_v49 = vld [vmem:[%s2218_s1 + $0x270] sm:$0xff]  ;;  %v981_v30 = vshrl.u32 %v980_v25, 7 }
  0x34   : > { %1380 = vmatpush3.bf16.msra.mxu1 %v1379_v59  ;;  %1316 = vmatprep.subr.bf16.mxu0 %v1315_v60  ;;  %v441_v41 = vld [vmem:[%s2218_s1 + $0x340] sm:$0xff]  ;;  %v936_v46 = vld [vmem:[%s1974_s21 + $0x18] sm:$0xff]  ;;  %v418_v50 = vld [vmem:[%s2218_s1 + $0x288] sm:$0xff] }
  0x35   : > { %1382 = vmatprep.subr.bf16.mxu1 %v1381_v0  ;;  %v325_v47 = vld [vmem:[%s1742_s12 + $0x18] sm:$0xff]  ;;  %v1393_v53 = vpack.c.bf16 %v444_v43, %v441_v41  ;;  %v422_v54 = vld [vmem:[%s2218_s1 + $0x2a8] sm:$0xff]  ;;  %v425_v55 = vld [vmem:[%s2218_s1 + $0x2c0] sm:$0xff]  ;;  %v1333_v59 = vpack.c.bf16 %v418_v50, %v415_v49  ;;  %v982_v35 = vsub.s32 0, %v981_v30  ;;  %v990_v39 = vsub.s32 2, %v981_v30 }
  0x36   : > { %v329_v52 = vld [vmem:[%s1742_s12 + $0x38] sm:$0xff]  ;;  %v447_v57 = vld [vmem:[%s2218_s1 + $0x370] sm:$0xff]  ;;  %v450_v58 = vld [vmem:[%s2218_s1 + $0x388] sm:$0xf]  ;;  %945 = vperm.xlu0 %1475, %v934_v45   ;;  %955 = vperm.xlu1 %1476, %v936_v46   ;;  %v1335_v62 = vpack.c.bf16 %v425_v55, %v422_v54 }
  0x37   : > { %1318 = vmatpush1.bf16.msra.mxu0 %v1317_v6  ;;  %v937_v60 = vld [vmem:[%s1974_s21 + $0x20] sm:$0xff]  ;;  %v328_v61 = vld [vmem:[%s1742_s12 + $0x30] sm:$0xff]  ;;  %v424_v0 = vld [vmem:[%s2218_s1 + $0x2b8] sm:$0xff]  ;;  %v1396_v2 = vpack.c.bf16 %v450_v58, %v447_v57 }
  0x38   : > { %1384 = vmatpush3.bf16.msra.mxu1 %v1383_v8  ;;  %1320 = vmatprep.subr.bf16.mxu0 %v1319_v9  ;;  %v421_v63 = vld [vmem:[%s2218_s1 + $0x2a0] sm:$0xff]  ;;  %v332_v1 = vld [vmem:[%s1742_s12 + $0x50] sm:$0xff]  ;;  %v428_v3 = vld [vmem:[%s2218_s1 + $0x2d8] sm:$0xff] }
  0x39   : > { %1386 = vmatprep.subr.bf16.mxu1 %v1385_v13  ;;  %v431_v4 = vld [vmem:[%s2218_s1 + $0x2f0] sm:$0xff]  ;;  %v1337_v5 = vpack.c.bf16 %v424_v0, %v421_v63  ;;  %v331_v6 = vld [vmem:[%s1742_s12 + $0x48] sm:$0xff]  ;;  %v334_v13 = vld [vmem:[%s1742_s12 + $0x60] sm:$0xff] }
  0x3a   : > { %960 = vperm.xlu0 %1475, %v937_v60   ;;  %v1339_v8 = vpack.c.bf16 %v431_v4, %v428_v3  ;;  %v427_v9 = vld [vmem:[%s2218_s1 + $0x2d0] sm:$0xff]  ;;  %v430_v10 = vld [vmem:[%s2218_s1 + $0x2e8] sm:$0xff] }
  0x3b   : > { %1322 = vmatpush1.bf16.msra.mxu0 %v1321_v18  ;;  %v335_v11 = vld [vmem:[%s1742_s12 + $0x68] sm:$0xff]  ;;  %v1341_v12 = vpack.c.bf16 %v430_v10, %v427_v9  ;;  %s282_s12 = sand.u32 1, %s1539_s16  }
  0x3c   : > { %1388 = vmatpush3.bf16.msra.mxu1 %v1387_v19  ;;  %1324 = vmatprep.subr.bf16.mxu0 %v1323_v20  ;;  %s1409_s13 = smul.u32 120, %s282_s12  ;;  %s2171_s30 = scalar_lea.sflag [#allocation3], %s282_s12 }
  0x3d   : > { %1389 = vmatprep.subr.bf16.mxu1 %v1560_v36 }
  0x3e   : > { %s2123_s14 = scalar_lea.vmem [#allocation2], %s1409_s13 }
  0x3f   : > { %732 = vmatmul.mubr.f32.vlgmr.msra.gmra.mrb[10].mxu1 %v1997_v32  ;;  %1326 = vmatpush1.bf16.msra.mxu0 %v1325_v29  ;;  %s1042_s24 = sshll.u32 %s2123_s14, 4  ;;  %s2162_s24 = int_to_ptr.vmem [resolvable:$true] %s1042_s24 }
  0x40   : > { %1391 = vmatpush3.bf16.msra.mxu1 %v1390_v33  ;;  %736 = vmatprep.mubr.f32.mxu1 %v2006_v37  ;;  %s1477_s21 = scalar_lea.vmem %s2162_s24, 1920  ;;  %p1484_p1 = scmp.lt.s32.totalorder %s2162_s24, %s1482_s7 }
  0x41   : > { %1328 = vmatprep.subr.bf16.mxu0 %v1327_v38  ;;  %1392 = vmatprep.subr.bf16.mxu1 %v1560_v36  ;;  %v986_v38 = vsub.s32 1, %v981_v30  ;;  %p1478_p12 = scmp.ne.s32.totalorder %s2162_s24, %s1477_s21  ;;  %p1485_p2 = scmp.lt.s32.totalorder %s1483_s5, %s1477_s21 }
  0x43   : > { %737 = vmatmul.mubr.f32.gmra.mrb[12].mxu1 %v325_v47  ;;  %1330 = vmatpush1.bf16.msra.mxu0 %v1329_v44  ;;  %p1479_p13 = pnand %p1478_p12, %p1630_p4  ;;  %p1486_p3 = por %p1485_p2, %p1484_p1 }
  0x44   : > { %741 = vmatprep.mubr.f32.mxu1 %v329_v52  ;;  %1332 = vmatprep.subr.bf16.mxu0 %v1331_v48 }
  0x45   : > { %1394 = vmatpush3.bf16.msra.mxu1 %v1393_v53  ;;  %p1480_p0 = pneg %p1479_p13 }
  0x46   : > { %1395 = vmatprep.subr.bf16.mxu1 %v1560_v36 }
  0x47   : > { %742 = vmatmul.mubr.f32.gmra.mrb[14].mxu1 %v328_v61  ;;  %1334 = vmatpush1.bf16.msra.mxu0 %v1333_v59  ;;  %p1487_p5 = pnand %p1486_p3, %p1480_p0 }
  0x48   : > { %746 = vmatprep.mubr.f32.mxu1 %v332_v1  ;;  %1336 = vmatprep.subr.bf16.mxu0 %v1335_v62 }
  0x49   : > { %1398 = vmatpush3.bf16.msk.msra.mxu1 %vm1716_vm2, %v1396_v2 }
  0x4b   : > { %747 = vmatmul.mubr.f32.gmra.mrb[16].mxu1 %v331_v6  ;;  %1338 = vmatpush1.bf16.msra.mxu0 %v1337_v5 }
  0x4c   : > { %751 = vmatprep.mubr.f32.mxu1 %v335_v11  ;;  %1340 = vmatprep.subr.bf16.mxu0 %v1339_v8 }
  0x4f   : > { %752 = vmatmul.mubr.f32.gmra.mrb[18].mxu1 %v334_v13  ;;  %1342 = vmatpush1.bf16.msra.mxu0 %v1341_v12 }
  0x50   : > { %1264 = vmatprep.mubr.msk.f32.mxu1 %vm1561_vm4, %v1557_v7 }
  0x52   : > { %542 = vmatmul.mubr.f32.vlgmr.msra.gmra.mrb[0].mxu0 %v1997_v32 }
  0x53   : > { %1265 = vmatmul.mubr.msk.f32.vlgmr.msra.gmra.mrb[20].mxu1 %vm451_vm3, %v1771_v51  ;;  %547 = vmatprep.mubr.f32.mxu0 %v2006_v37  ;;  %v978_v37 = vld [vmem:[%s2220_s3] sm:$0x7] }
  0x54   : > { %1267 = vmatprep.mubr.msk.f32.mxu1 %vm1561_vm4, %v1557_v7  ;;  %v2118_v53 = vrot.slane %v978_v37, %v990_v39 }
  0x56   : > { %548 = vmatmul.mubr.f32.gmra.mrb[2].mxu0 %v325_v47  ;;  %v2114_v47 = vrot.slane %v978_v37, %v982_v35 }
  0x57   : > { %1268 = vmatmul.mubr.msk.f32.gmra.mrb[22].mxu1 %vm451_vm3, %v1833_v16  ;;  %553 = vmatprep.mubr.f32.mxu0 %v329_v52  ;;  %v2116_v52 = vrot.slane %v978_v37, %v986_v38 }
  0x58   : > { %1270 = vmatprep.mubr.msk.f32.mxu1 %vm1561_vm4, %v1557_v7 }
  0x5a   : > { %554 = vmatmul.mubr.f32.gmra.mrb[4].mxu0 %v328_v61 }
  0x5b   : > { %1271 = vmatmul.mubr.msk.f32.gmra.mrb[24].mxu1 %vm451_vm3, %v1863_v28  ;;  %559 = vmatprep.mubr.f32.mxu0 %v332_v1 }
  0x5c   : > { %1273 = vmatprep.mubr.msk.f32.mxu1 %vm1561_vm4, %v1557_v7 }
  0x5e   : > { %560 = vmatmul.mubr.f32.gmra.mrb[6].mxu0 %v331_v6 }
  0x5f   : > { %1274 = vmatmul.mubr.msk.f32.gmra.mrb[26].mxu1 %vm451_vm3, %v1893_v42  ;;  %565 = vmatprep.mubr.f32.mxu0 %v335_v11 }
  0x60   : > { %1276 = vmatprep.mubr.msk.f32.mxu1 %vm1561_vm4, %v1557_v7 }
  0x62   : > { %566 = vmatmul.mubr.f32.gmra.mrb[8].mxu0 %v334_v13 }
  0x63   : > { %1277 = vmatmul.mubr.msk.f32.gmra.mrb[28].mxu1 %vm451_vm3, %v1923_v56 }
  0xb1   : > { %v941_v40 = vpop.permute.xlu0 %940  ;;  %v951_v5 = vpop.permute.xlu1 %950 }
  0xb5   : > { %v946_v59 = vpop.permute.xlu0 %945 }
  0xf2   : > { %v638_v31 = vpop.f32.mrb[0].mxu1 }
  0xf3   : > { %v640_v51 = vpop.f32.mrb[1].mxu1 }
  0xf6   : > { %v644_v16 = vpop.f32.mrb[2].mxu1 }
  0xf7   : > { %v646_v28 = vpop.f32.mrb[3].mxu1 }
  0xfa   : > { %v2092_v14 = vpop.f32.mrb[4].mxu1 }
  0xfb   : > { %v2094_v15 = vpop.f32.mrb[5].mxu1 }
  0xfe   : > { %v2096_v17 = vpop.f32.mrb[6].mxu1 }
  0xff   : > { %v2098_v18 = vpop.f32.mrb[7].mxu1 }
 0x102   : > { %v2100_v42 = vpop.f32.mrb[8].mxu1 }
 0x103   : > { %v2102_v19 = vpop.f32.mrb[9].mxu1 }
 0x112   : > { %v1226_v7 = vpop.f32.mrb[10].mxu1 }
 0x113   : > { %v1227_v20 = vpop.f32.mrb[11].mxu1 }
 0x114   : > { %v1228_v56 = vadd.f32 %v1227_v20, %v1226_v7 }
 0x116   : > { %v1229_v21 = vpop.f32.mrb[12].mxu1 }
 0x117   : > { %v1230_v22 = vpop.f32.mrb[13].mxu1 }
 0x118   : > { %v1231_v23 = vadd.f32 %v1230_v22, %v1229_v21 }
 0x11a   : > { %v1232_v24 = vpop.f32.mrb[14].mxu1 }
 0x11b   : > { %v1233_v26 = vpop.f32.mrb[15].mxu1 }
 0x11c   : > { %v1234_v27 = vadd.f32 %v1233_v26, %v1232_v24 }
 0x11e   : > { %v1235_v29 = vpop.f32.mrb[16].mxu1 }
 0x11f   : > { %v1236_v32 = vpop.f32.mrb[17].mxu1 }
 0x120   : > { %v2104_v33 = vadd.f32 %v1236_v32, %v1235_v29 }
 0x122   : > { %v1238_v34 = vpop.f32.mrb[18].mxu1 }
 0x123   : > { %v1239_v36 = vpop.f32.mrb[19].mxu1 }
 0x124   : > { %v2110_v41 = vadd.f32 %v1239_v36, %v1238_v34 }
 0x125   : > { %v543_v43 = vpop.f32.mrb[0].mxu0 }
 0x126   : > { %v639_v44 = vadd.f32 %v638_v31, %v543_v43  ;;  %v823_v45 = vpop.f32.mrb[20].mxu1  ;;  %v545_v46 = vpop.f32.mrb[1].mxu0 }
 0x127   : > { %v824_v48 = vadd.f32 %v1228_v56, %v823_v45  ;;  %v641_v49 = vadd.f32 %v640_v51, %v545_v46  ;;  %v1266_v50 = vpop.f32.mrb[21].mxu1  ;;  %v961_v45 = vpop.permute.xlu0 %960 }
 0x128   : > { %v963_v54 = vmul.f32 %v941_v40, %v639_v44 }
 0x129   : > { %v549_v55 = vpop.f32.mrb[2].mxu0  ;;  %v964_v57 = vmul.f32 %v941_v40, %v641_v49  ;;  %v965_v58 = vmul.f32 %v941_v40, %v824_v48 }
 0x12a   : > { %v645_v60 = vadd.f32 %v644_v16, %v549_v55  ;;  %v828_v61 = vpop.f32.mrb[22].mxu1  ;;  %v551_v62 = vpop.f32.mrb[3].mxu0  ;;  %v995_v63 = vmul.f32 %v2114_v47, %v963_v54 }
 0x12b   : > { %v829_v0 = vadd.f32 %v1231_v23, %v828_v61  ;;  %v647_v1 = vadd.f32 %v646_v28, %v551_v62  ;;  %v1269_v2 = vpop.f32.mrb[23].mxu1  ;;  %v996_v3 = vmul.f32 %v2116_v52, %v964_v57  ;;  %v997_v4 = vmul.f32 %v2118_v53, %v965_v58  ;;  %v956_v23 = vpop.permute.xlu1 %955 }
 0x12c   : > { %1010 = vst [vmem:[%s2123_s14] sm:$0xff] %v995_v63  ;;  %v966_v6 = vmul.f32 %v946_v59, %v645_v60 }
 0x12d   : > { %v555_v8 = vpop.f32.mrb[4].mxu0  ;;  %1011 = vst [vmem:[%s2123_s14 + $0x8] sm:$0xff] %v996_v3  ;;  %1012 = vst [vmem:[%s2123_s14 + $0x10] sm:$0xff] %v997_v4  ;;  %v967_v9 = vmul.f32 %v946_v59, %v647_v1  ;;  %v968_v10 = vmul.f32 %v946_v59, %v829_v0 }
 0x12e   : > { %v651_v11 = vadd.f32 %v2092_v14, %v555_v8  ;;  %v833_v12 = vpop.f32.mrb[24].mxu1  ;;  %v557_v13 = vpop.f32.mrb[5].mxu0  ;;  %v998_v31 = vmul.f32 %v2114_v47, %v966_v6 }
 0x12f   : > { %v834_v51 = vadd.f32 %v1234_v27, %v833_v12  ;;  %v653_v16 = vadd.f32 %v2094_v15, %v557_v13  ;;  %v1272_v28 = vpop.f32.mrb[25].mxu1  ;;  %v999_v7 = vmul.f32 %v2116_v52, %v967_v9  ;;  %v1000_v20 = vmul.f32 %v2118_v53, %v968_v10 }
 0x130   : > { %1013 = vst [vmem:[%s2123_s14 + $0x18] sm:$0xff] %v998_v31  ;;  %v969_v56 = vmul.f32 %v951_v5, %v651_v11 }
 0x131   : > { %v561_v21 = vpop.f32.mrb[6].mxu0  ;;  %1014 = vst [vmem:[%s2123_s14 + $0x20] sm:$0xff] %v999_v7  ;;  %1015 = vst [vmem:[%s2123_s14 + $0x28] sm:$0xff] %v1000_v20  ;;  %v970_v14 = vmul.f32 %v951_v5, %v653_v16  ;;  %v971_v22 = vmul.f32 %v951_v5, %v834_v51 }
 0x132   : > { %v657_v24 = vadd.f32 %v2096_v17, %v561_v21  ;;  %v838_v25 = vpop.f32.mrb[26].mxu1  ;;  %v563_v15 = vpop.f32.mrb[7].mxu0  ;;  %v1001_v26 = vmul.f32 %v2114_v47, %v969_v56 }
 0x133   : > { %v839_v27 = vadd.f32 %v2104_v33, %v838_v25  ;;  %v659_v29 = vadd.f32 %v2098_v18, %v563_v15  ;;  %v1275_v30 = vpop.f32.mrb[27].mxu1  ;;  %v1002_v32 = vmul.f32 %v2116_v52, %v970_v14  ;;  %v1003_v34 = vmul.f32 %v2118_v53, %v971_v22 }
 0x134   : > { %1016 = vst [vmem:[%s2123_s14 + $0x30] sm:$0xff] %v1001_v26  ;;  %v972_v35 = vmul.f32 %v956_v23, %v657_v24 }
 0x135   : > { %v567_v36 = vpop.f32.mrb[8].mxu0  ;;  %1017 = vst [vmem:[%s2123_s14 + $0x38] sm:$0xff] %v1002_v32  ;;  %1018 = vst [vmem:[%s2123_s14 + $0x40] sm:$0xff] %v1003_v34  ;;  %v973_v17 = vmul.f32 %v956_v23, %v659_v29  ;;  %v974_v37 = vmul.f32 %v956_v23, %v839_v27 }
 0x136   : > { %v663_v38 = vadd.f32 %v2100_v42, %v567_v36  ;;  %v843_v33 = vpop.f32.mrb[28].mxu1  ;;  %v569_v18 = vpop.f32.mrb[9].mxu0  ;;  %v1004_v39 = vmul.f32 %v2114_v47, %v972_v35 }
 0x137   : > { %v844_v40 = vadd.f32 %v2110_v41, %v843_v33  ;;  %v665_v43 = vadd.f32 %v2102_v19, %v569_v18  ;;  %v1278_v44 = vpop.f32.mrb[29].mxu1  ;;  %v1005_v46 = vmul.f32 %v2116_v52, %v973_v17  ;;  %v1006_v42 = vmul.f32 %v2118_v53, %v974_v37 }
 0x138   : > { %v975_v48 = vmul.f32 %v961_v45, %v663_v38  ;;  %1019 = vst [vmem:[%s2123_s14 + $0x48] sm:$0xff] %v1004_v39 }
 0x139   : > { %v976_v49 = vmul.f32 %v961_v45, %v665_v43  ;;  %v977_v50 = vmul.f32 %v961_v45, %v844_v40  ;;  %1020 = vst [vmem:[%s2123_s14 + $0x50] sm:$0xff] %v1005_v46  ;;  %1021 = vst [vmem:[%s2123_s14 + $0x58] sm:$0xff] %v1006_v42 }
 0x13a   : > { %v1007_v19 = vmul.f32 %v2114_v47, %v975_v48 }
 0x13b   : > { %v1008_v41 = vmul.f32 %v2116_v52, %v976_v49  ;;  %v1009_v54 = vmul.f32 %v2118_v53, %v977_v50 }
 0x13c   : > { %1022 = vst [vmem:[%s2123_s14 + $0x60] sm:$0xff] %v1007_v19 }
 0x13d   : > { %1023 = vst [vmem:[%s2123_s14 + $0x68] sm:$0xff] %v1008_v41  ;;  %1024 = vst [vmem:[%s2123_s14 + $0x70] sm:$0xff] %v1009_v54 }
 0x13e   : > { %1490 = shalt.err (!%p1487_p5)
}
 0x13f   : > { %s1491_s8 = scalar_lea.hbm %s2160_s29, 1920  ;;  %s1495_s11 = scalar_lea.hbm %s2221_s4, 3840 }
 0x140   : > { %p1492_p6 = scmp.ne.s32.totalorder %s2160_s29, %s1491_s8  ;;  %p1496_p10 = scmp.lt.u32.totalorder %s2160_s29, %s2221_s4 }
 0x141   : > { %p1497_p11 = scmp.lt.u32.totalorder %s1495_s11, %s1491_s8  ;;  %p1499_p13 = scmp.lt.u32.totalorder %s1491_s8, %s2160_s29 }
 0x142   : > { %p1493_p7 = pnand %p1492_p6, %p1630_p4 }
 0x143   : > { %p1498_p12 = por %p1497_p11, %p1496_p10 }
 0x144   : > { %p1494_p9 = pneg %p1493_p7 }
 0x145   : > { %p1500_p0 = por %p1499_p13, %p1498_p12 }
 0x147   : > { %p1501_p1 = pnand %p1500_p0, %p1494_p9 }
 0x149   : > { %1504 = shalt.err (!%p1501_p1)
}
 0x14a   : > { %s1563_s14 = smov 384   ;;  %s1564_s22 = smov 24  }
 0x14b   : > { %1412 = dma.vmem_to_hbm [thread:$0]  (%p1630_p4), %s2162_s24, 1920, %s2160_s29, %s2171_s30, %s1563_s14, %s1563_s14, %s1564_s22  }
 0x14c PF: > { %p1419_p2 = scmp.ge.s32.totalorder %s1555_s20, 2  ;;  %s1057_s18 = sand.u32 1, %s1535_s15  }
 0x14d   : > { %s1058_s26 = scalar_lea.sflag [#allocation3], %s1057_s18 }
 0x14e   : > { %p1415_p3 = pnand %p1419_p2, %p1637_p8 }
 0x150   : > { %1530 = dma.done.wait (!%p1415_p3), %s1058_s26, 1920  }
 0x151   : > { %1532 = vsyncadd (!%p1415_p3), %s1058_s26, 4294965376  ;;  %s17_s20 = sadd.s32 1, %s1555_s20   ;;  %s2227_s15 = smov %s1539_s16 }
 0x152   : > { %p14_p5 = scmp.ge.s32.totalorder %s17_s20, 4   ;;  %s2228_s16 = smov %s1543_s17 }
 0x153   : > { %s2229_s17 = smov %s1643_s28  ;;  %s2230_s18 = smov %s1551_s19 }
 0x154   : > { %s2231_s19 = smov %s2233_s23  ;;  %16 = sbr.rel (!%p14_p5) target bundleno = 4 (0x4), region = 92 }
 0x15b   :  { %1063 = vsyncpa [#allocation3], 1 }
 0x15c   :  { %1065 = vsyncpa [#allocation3 + $0x1], 1 }

</bundles_post_ra>
